<compile_context>
chip_gen: v7x
topology: tpu7x:2x2x1
jax: 0.10.0
libtpu: 0.0.40
codegen_flags: <defaults>
</compile_context>

<pallas_src>
from functools import partial

import jax
import jax.numpy as jnp
from jax.experimental import pallas as pl
from jax.experimental.pallas import tpu as pltpu


# ---------------------------------------------------------------------------
# Kernel 1: (optional BN + ReLU of previous layer output) fused with the
# hoisted input projection X @ Wx over the flattened (T*N, Fin) rows.
# ---------------------------------------------------------------------------
def bn_relu_proj_kernel(x_ref, scale_ref, shift_ref, wx_ref, out_ref, *, apply_act):
    x = x_ref[...].astype(jnp.float32)
    if apply_act:
        # y = relu(gamma*(x-mean)*rsqrt(var+eps)+beta) folded to relu(x*scale+shift)
        x = jnp.maximum(x * scale_ref[...] + shift_ref[...], 0.0)
    out_ref[...] = jnp.dot(x.astype(wx_ref.dtype), wx_ref[...],
                           preferred_element_type=jnp.float32)


def bn_relu_proj(x, scale, shift, wx, *, apply_act):
    T, N, fin = x.shape
    four_f = wx.shape[1]
    rows = T * N
    x2 = x.reshape(rows, fin)
    tm = 512 if (rows > 512 and rows % 512 == 0) else rows
    out = pl.pallas_call(
        partial(bn_relu_proj_kernel, apply_act=apply_act),
        out_shape=jax.ShapeDtypeStruct((rows, four_f), jnp.float32),
        grid_spec=pltpu.PrefetchScalarGridSpec(
            num_scalar_prefetch=0,
            grid=(rows // tm,),
            in_specs=[
                pl.BlockSpec((tm, fin), lambda i: (i, 0)),       # X rows
                pl.BlockSpec((1, fin), lambda i: (0, 0)),        # BN scale (resident)
                pl.BlockSpec((1, fin), lambda i: (0, 0)),        # BN shift (resident)
                pl.BlockSpec((fin, four_f), lambda i: (0, 0)),   # Wx (resident)
            ],
            out_specs=pl.BlockSpec((tm, four_f), lambda i: (i, 0)),
        ),
        compiler_params=pltpu.CompilerParams(
            dimension_semantics=("parallel",)),
    )(x2, scale, shift, wx)
    return out.reshape(T, N, four_f)


# ---------------------------------------------------------------------------
# Kernel 2: recurrent GConvLSTM over time.  grid=(T,), H/C in VMEM scratch.
# Streams raw H_t (bf16) per step and accumulates per-channel BN statistics.
# ---------------------------------------------------------------------------
def gconv_lstm_kernel(a_ref, xw_ref, wh_ref, b_ref, wci_ref, wcf_ref, wco_ref,
                      h_ref, sum_ref, ssq_ref, h_scr, c_scr):
    t = pl.program_id(0)
    F = c_scr.shape[-1]

    @pl.when(t == 0)
    def _init():
        h_scr[...] = jnp.zeros_like(h_scr)
        c_scr[...] = jnp.zeros_like(c_scr)
        sum_ref[...] = jnp.zeros_like(sum_ref)
        ssq_ref[...] = jnp.zeros_like(ssq_ref)

    a = a_ref[0]                     # (N, N)   bf16
    xw = xw_ref[0]                   # (N, 4F)  f32 (precomputed X@Wx)
    h = h_scr[...]                   # (N, F)   f32
    c = c_scr[...]                   # (N, F)   f32

    # Fused GCNConv message path: A @ (X@Wx + H@Wh); bias added post-aggregation.
    hw = jnp.dot(h.astype(wh_ref.dtype), wh_ref[...],
                 preferred_element_type=jnp.float32)
    msg = (xw + hw).astype(a.dtype)  # bf16 for the MXU
    g = jnp.dot(a, msg, preferred_element_type=jnp.float32) + b_ref[...]

    # Per-gate math: transcendentals only on the slices actually consumed,
    # peephole terms only on i/f/o (no jnp.tile of C across 4F).
    i_gate = jax.nn.sigmoid(g[:, 0 * F:1 * F] + wci_ref[...] * c)
    f_gate = jax.nn.sigmoid(g[:, 1 * F:2 * F] + wcf_ref[...] * c)
    t_cand = jnp.tanh(g[:, 2 * F:3 * F])
    c_new = f_gate * c + i_gate * t_cand
    o_gate = jax.nn.sigmoid(g[:, 3 * F:4 * F] + wco_ref[...] * c_new)
    h_new = o_gate * jnp.tanh(c_new)

    h_scr[...] = h_new
    c_scr[...] = c_new
    h_ref[0] = h_new.astype(h_ref.dtype)             # per-t bf16 stream to HBM

    # Incremental BatchNorm statistics (per channel, over N*T), f32 accumulators.
    sum_ref[...] += jnp.sum(h_new, axis=0, keepdims=True)
    ssq_ref[...] += jnp.sum(h_new * h_new, axis=0, keepdims=True)


def _recurrent_vmem_bytes(N, fout):
    four_f = 4 * fout
    dbl_buffered = 2 * (N * N * 2           # A_t bf16
                        + N * four_f * 4    # XW_t f32
                        + N * fout * 2)     # H_t out bf16
    resident = (fout * four_f * 2           # Wh bf16
                + four_f * 4                # combined bias
                + 3 * fout * 4              # peepholes
                + 2 * fout * 4              # sum / sumsq accumulators
                + 2 * N * fout * 4)         # H, C scratch
    return dbl_buffered + resident


def gconv_lstm_layer(a_bf16, xw, lp, *, out_dtype=jnp.bfloat16):
    T, N, four_f = xw.shape
    fout = four_f // 4
    # Explicit VMEM budget (review: v7x has 64 MiB physical, 32 MiB default scope).
    budget = _recurrent_vmem_bytes(N, fout)
    vmem_limit = int(min(max(4 * budget, 16 << 20), 48 << 20))
    return pl.pallas_call(
        gconv_lstm_kernel,
        out_shape=(jax.ShapeDtypeStruct((T, N, fout), out_dtype),    # raw H stream
                   jax.ShapeDtypeStruct((1, fout), jnp.float32),     # sum
                   jax.ShapeDtypeStruct((1, fout), jnp.float32)),    # sum of squares
        grid_spec=pltpu.PrefetchScalarGridSpec(
            num_scalar_prefetch=0,
            grid=(T,),
            in_specs=[
                pl.BlockSpec((1, N, N), lambda t: (t, 0, 0)),        # A_t
                pl.BlockSpec((1, N, four_f), lambda t: (t, 0, 0)),   # XW_t (precomputed)
                pl.BlockSpec((fout, four_f), lambda t: (0, 0)),      # Wh (resident)
                pl.BlockSpec((1, four_f), lambda t: (0, 0)),         # bx+bh+b_gate
                pl.BlockSpec((1, fout), lambda t: (0, 0)),           # w_c_i
                pl.BlockSpec((1, fout), lambda t: (0, 0)),           # w_c_f
                pl.BlockSpec((1, fout), lambda t: (0, 0)),           # w_c_o
            ],
            out_specs=[
                pl.BlockSpec((1, N, fout), lambda t: (t, 0, 0)),     # per-t writeback
                pl.BlockSpec((1, fout), lambda t: (0, 0)),           # resident accum
                pl.BlockSpec((1, fout), lambda t: (0, 0)),           # resident accum
            ],
            scratch_shapes=[pltpu.VMEM((N, fout), jnp.float32),      # H
                            pltpu.VMEM((N, fout), jnp.float32)],     # C
        ),
        compiler_params=pltpu.CompilerParams(
            dimension_semantics=("arbitrary",),
            vmem_limit_bytes=vmem_limit),
    )(a_bf16, xw, lp["wh"], lp["b_all"], lp["wci"], lp["wcf"], lp["wco"])


# ---------------------------------------------------------------------------
# Kernel 3: final-layer BatchNorm normalize + ReLU (scale/shift precomputed).
# ---------------------------------------------------------------------------
def bn_relu_kernel(x_ref, scale_ref, shift_ref, out_ref):
    x = x_ref[...].astype(jnp.float32)
    out_ref[...] = jnp.maximum(x * scale_ref[...] + shift_ref[...], 0.0)


def bn_relu_finalize(x, scale, shift):
    T, N, F = x.shape
    return pl.pallas_call(
        bn_relu_kernel,
        out_shape=jax.ShapeDtypeStruct((T, N, F), jnp.float32),
        grid_spec=pltpu.PrefetchScalarGridSpec(
            num_scalar_prefetch=0,
            grid=(T,),
            in_specs=[
                pl.BlockSpec((1, N, F), lambda t: (t, 0, 0)),
                pl.BlockSpec((1, F), lambda t: (0, 0)),
                pl.BlockSpec((1, F), lambda t: (0, 0)),
            ],
            out_specs=pl.BlockSpec((1, N, F), lambda t: (t, 0, 0)),
        ),
        compiler_params=pltpu.CompilerParams(
            dimension_semantics=("parallel",)),
    )(x, scale, shift)


# ---------------------------------------------------------------------------
# Parameter construction (glorot-ish conv weights, zero LSTM gate biases,
# BatchNorm gamma=1 / beta=0) — matches GConvLSTM / EGCN __init__ shapes.
# ---------------------------------------------------------------------------
def glorot(key, shape):
    fan_in, fan_out = shape[-2], shape[-1]
    limit = jnp.sqrt(6.0 / (fan_in + fan_out))
    return jax.random.uniform(key, shape, jnp.float32, -limit, limit)


def make_lstm_layer_params(key, fin, fout):
    ks = jax.random.split(key, 5)
    # conv_x_{i,f,c,o} / conv_h_{i,f,c,o} weights stacked -> (fin|fout, 4*fout)
    wx = glorot(ks[0], (fin, 4 * fout))
    bx = 0.01 * jax.random.normal(ks[1], (1, 4 * fout), jnp.float32)
    wh = glorot(ks[2], (fout, 4 * fout))
    bh = 0.01 * jax.random.normal(ks[3], (1, 4 * fout), jnp.float32)
    # peephole weights w_c_{i,f,o} (glorot); gate biases b_{i,f,c,o} = zeros.
    wc = glorot(ks[4], (1, 3 * fout))
    bg = jnp.zeros((1, 4 * fout), jnp.float32)
    return {
        "wx": wx.astype(jnp.bfloat16),
        "wh": wh.astype(jnp.bfloat16),
        "b_all": bx + bh + bg,                # conv_x bias + conv_h bias + gate bias
        "wci": wc[:, 0 * fout:1 * fout],
        "wcf": wc[:, 1 * fout:2 * fout],
        "wco": wc[:, 2 * fout:3 * fout],
    }


def build_dense_adj(key, num_nodes, num_edges):
    ks = jax.random.split(key, 3)
    src = jax.random.randint(ks[0], (num_edges,), 0, num_nodes)
    dst = jax.random.randint(ks[1], (num_edges,), 0, num_nodes)
    w = jax.random.uniform(ks[2], (num_edges,), jnp.float32, 0.1, 1.0)
    a = jnp.zeros((num_nodes, num_nodes), jnp.float32)
    a = a.at[dst, src].add(w)                      # messages src -> dst
    a = a + jnp.eye(num_nodes, dtype=jnp.float32)  # self loops (weight 1)
    return a


# ---------------------------------------------------------------------------
# EGCN forward: per layer -> hoisted BN+ReLU+X@Wx pre-pass, recurrent LSTM
# kernel with incremental BN stats, then finish BN in the next pre-pass
# (or the finalize kernel for the last layer).  Slice [start:] at the end.
# ---------------------------------------------------------------------------
@partial(jax.jit, static_argnums=(4,))
def egcn_forward(feature, adjs, layer_params, bn_params, start):
    T, N, fin0 = feature.shape
    adjs_bf16 = adjs.astype(jnp.bfloat16)
    x = feature                                            # (T, N, Fin) f32 for layer 0
    scale = jnp.ones((1, fin0), jnp.float32)               # unused when apply_act=False
    shift = jnp.zeros((1, fin0), jnp.float32)
    cnt = float(T * N)
    for li, (lp, (gamma, beta)) in enumerate(zip(layer_params, bn_params)):
        # Pre-pass: previous layer's BN+ReLU fused with the hoisted X@Wx.
        xw = bn_relu_proj(x, scale, shift, lp["wx"], apply_act=(li > 0))
        # Recurrent pass over time; raw H_t streamed out in bf16 + BN accumulators.
        h_raw, s1, s2 = gconv_lstm_layer(adjs_bf16, xw, lp, out_dtype=jnp.bfloat16)
        # BatchNorm1d training-mode statistics over (N, T) per channel
        # (matches normfn(X.permute(1,2,0)) in the reference).
        mean = s1 / cnt
        var = jnp.maximum(s2 / cnt - mean * mean, 0.0)
        inv_std = jax.lax.rsqrt(var + 1e-5)
        scale = gamma * inv_std
        shift = beta - mean * scale
        x = h_raw
        # TODO(synk): torch.nn.Dropout(p=0) / dgl.DropEdge(0) are identities; omitted.
    y = bn_relu_finalize(x, scale, shift)                  # last layer's BN + ReLU, f32
    return y[start:, :, :]


if __name__ == "__main__":
    key = jax.random.PRNGKey(0)

    # Small shapes consistent with the module's defaults/structure.
    T = 4            # time steps (end = T)
    N = 16           # nodes
    E = 48           # edges per time step
    input_dim = 32
    hidden_dim = 32
    output_dim = 32
    num_layers = 3
    start = 1

    dims = [input_dim] + (num_layers - 1) * [hidden_dim] + [output_dim]

    k_feat, k_graph, k_param = jax.random.split(key, 3)

    feature = jax.random.normal(k_feat, (T, N, input_dim), jnp.float32)
    adjs = jnp.stack([build_dense_adj(k, N, E)
                      for k in jax.random.split(k_graph, T)], axis=0)

    layer_params, bn_params = [], []
    pkeys = jax.random.split(k_param, num_layers)
    for layer in range(num_layers):
        fin, fout = dims[layer], dims[layer + 1]
        layer_params.append(make_lstm_layer_params(pkeys[layer], fin, fout))
        bn_params.append((jnp.ones((1, fout), jnp.float32),
                          jnp.zeros((1, fout), jnp.float32)))

    out = egcn_forward(feature, adjs, layer_params, bn_params, start)
    out = jax.block_until_ready(out)
    assert out.shape == (T - start, N, output_dim)
    assert jnp.all(jnp.isfinite(out))
    print("KERNEL_OK")
</pallas_src>

<mosaic_0001>
module attributes {stable_mosaic.version = 11 : i64} {
  func.func @bn_relu_proj_kernel(%arg0: i32, %arg1: memref<64x32xf32, #tpu.memory_space<vmem>>, %arg2: memref<1x32xf32, #tpu.memory_space<vmem>>, %arg3: memref<1x32xf32, #tpu.memory_space<vmem>>, %arg4: memref<32x128xbf16, #tpu.memory_space<vmem>>, %arg5: memref<64x128xf32, #tpu.memory_space<vmem>>) attributes {dimension_semantics = [#tpu.dimension_semantics<parallel>], iteration_bounds = array<i64: 1>, scalar_prefetch = 0 : i64, scratch_operands = 0 : i64, tpu.core_type = #tpu.core_type<tc>, window_params = [{transform_indices = @transform_0, window_bounds = array<i64: 64, 32>}, {pipeline_mode = #tpu.pipeline_mode<synchronous>, transform_indices = @transform_1, window_bounds = array<i64: 1, 32>}, {pipeline_mode = #tpu.pipeline_mode<synchronous>, transform_indices = @transform_2, window_bounds = array<i64: 1, 32>}, {pipeline_mode = #tpu.pipeline_mode<synchronous>, transform_indices = @transform_3, window_bounds = array<i64: 32, 128>}, {transform_indices = @transform_4, window_bounds = array<i64: 64, 128>}]} {
    %c0 = arith.constant 0 : index
    %c0_0 = arith.constant 0 : index
    %0 = vector.load %arg1[%c0, %c0_0] : memref<64x32xf32, #tpu.memory_space<vmem>>, vector<64x32xf32>
    %1 = arith.truncf %0 : vector<64x32xf32> to vector<64x32xbf16>
    %c0_1 = arith.constant 0 : index
    %c0_2 = arith.constant 0 : index
    %2 = vector.load %arg4[%c0_1, %c0_2] : memref<32x128xbf16, #tpu.memory_space<vmem>>, vector<32x128xbf16>
    %cst = arith.constant dense<0.000000e+00> : vector<64x128xf32>
    %3 = tpu.matmul %1, %2, %cst {dimension_numbers = #tpu.dot_dimension_numbers<[1], [0], [0], [1], [0, 0, 1, 1], [], []>} : vector<64x32xbf16>, vector<32x128xbf16>, vector<64x128xf32> -> vector<64x128xf32>
    %c0_3 = arith.constant 0 : index
    %c0_4 = arith.constant 0 : index
    %4 = vector.load %arg5[%c0_3, %c0_4] : memref<64x128xf32, #tpu.memory_space<vmem>>, vector<64x128xf32>
    tpu.vector_store %arg5[%c0_3, %c0_4], %3 {strides = array<i32>} : memref<64x128xf32, #tpu.memory_space<vmem>>, vector<64x128xf32>,
    return
  }
  func.func @transform_0(%arg0: i32) -> (i32, i32) {
    %c0_i32 = arith.constant 0 : i32
    %c0_i32_0 = arith.constant 0 : i32
    return %arg0, %c0_i32 : i32, i32
  }
  func.func @transform_1(%arg0: i32) -> (i32, i32) {
    %c0_i32 = arith.constant 0 : i32
    %c0_i32_0 = arith.constant 0 : i32
    %c0_i32_1 = arith.constant 0 : i32
    return %c0_i32, %c0_i32_0 : i32, i32
  }
  func.func @transform_2(%arg0: i32) -> (i32, i32) {
    %c0_i32 = arith.constant 0 : i32
    %c0_i32_0 = arith.constant 0 : i32
    %c0_i32_1 = arith.constant 0 : i32
    return %c0_i32, %c0_i32_0 : i32, i32
  }
  func.func @transform_3(%arg0: i32) -> (i32, i32) {
    %c0_i32 = arith.constant 0 : i32
    %c0_i32_0 = arith.constant 0 : i32
    %c0_i32_1 = arith.constant 0 : i32
    return %c0_i32, %c0_i32_0 : i32, i32
  }
  func.func @transform_4(%arg0: i32) -> (i32, i32) {
    %c0_i32 = arith.constant 0 : i32
    %c0_i32_0 = arith.constant 0 : i32
    return %arg0, %c0_i32 : i32, i32
  }
}

module attributes {stable_mosaic.version = 11 : i64} {
  func.func @gconv_lstm_kernel(%arg0: i32, %arg1: memref<1x16x16xbf16, #tpu.memory_space<vmem>>, %arg2: memref<1x16x128xf32, #tpu.memory_space<vmem>>, %arg3: memref<32x128xbf16, #tpu.memory_space<vmem>>, %arg4: memref<1x128xf32, #tpu.memory_space<vmem>>, %arg5: memref<1x32xf32, #tpu.memory_space<vmem>>, %arg6: memref<1x32xf32, #tpu.memory_space<vmem>>, %arg7: memref<1x32xf32, #tpu.memory_space<vmem>>, %arg8: memref<1x16x32xbf16, #tpu.memory_space<vmem>>, %arg9: memref<1x32xf32, #tpu.memory_space<vmem>>, %arg10: memref<1x32xf32, #tpu.memory_space<vmem>>, %arg11: memref<16x32xf32, #tpu.memory_space<vmem>>, %arg12: memref<16x32xf32, #tpu.memory_space<vmem>>) attributes {dimension_semantics = [#tpu.dimension_semantics<arbitrary>], iteration_bounds = array<i64: 4>, scalar_prefetch = 0 : i64, scratch_operands = 2 : i64, tpu.core_type = #tpu.core_type<tc>, window_params = [{transform_indices = @transform_0, window_bounds = array<i64: 1, 16, 16>}, {transform_indices = @transform_1, window_bounds = array<i64: 1, 16, 128>}, {pipeline_mode = #tpu.pipeline_mode<synchronous>, transform_indices = @transform_2, window_bounds = array<i64: 32, 128>}, {pipeline_mode = #tpu.pipeline_mode<synchronous>, transform_indices = @transform_3, window_bounds = array<i64: 1, 128>}, {pipeline_mode = #tpu.pipeline_mode<synchronous>, transform_indices = @transform_4, window_bounds = array<i64: 1, 32>}, {pipeline_mode = #tpu.pipeline_mode<synchronous>, transform_indices = @transform_5, window_bounds = array<i64: 1, 32>}, {pipeline_mode = #tpu.pipeline_mode<synchronous>, transform_indices = @transform_6, window_bounds = array<i64: 1, 32>}, {transform_indices = @transform_7, window_bounds = array<i64: 1, 16, 32>}, {pipeline_mode = #tpu.pipeline_mode<synchronous>, transform_indices = @transform_8, window_bounds = array<i64: 1, 32>}, {pipeline_mode = #tpu.pipeline_mode<synchronous>, transform_indices = @transform_9, window_bounds = array<i64: 1, 32>}]} {
    %c0_i32 = arith.constant 0 : i32
    %0 = arith.cmpi eq, %arg0, %c0_i32 : i32
    %1 = arith.extui %0 : i1 to i32
    %c0_i32_0 = arith.constant 0 : i32
    %2 = arith.cmpi ne, %1, %c0_i32_0 : i32
    scf.if %2 {
      %cst_41 = arith.constant 0.000000e+00 : f32
      %72 = vector.broadcast %cst_41 : f32 to vector<16x32xf32>
      %c0_42 = arith.constant 0 : index
      %c0_43 = arith.constant 0 : index
      %73 = vector.load %arg11[%c0_42, %c0_43] : memref<16x32xf32, #tpu.memory_space<vmem>>, vector<16x32xf32>
      tpu.vector_store %arg11[%c0_42, %c0_43], %72 {strides = array<i32>} : memref<16x32xf32, #tpu.memory_space<vmem>>, vector<16x32xf32>,
      %cst_44 = arith.constant 0.000000e+00 : f32
      %74 = vector.broadcast %cst_44 : f32 to vector<16x32xf32>
      %c0_45 = arith.constant 0 : index
      %c0_46 = arith.constant 0 : index
      %75 = vector.load %arg12[%c0_45, %c0_46] : memref<16x32xf32, #tpu.memory_space<vmem>>, vector<16x32xf32>
      tpu.vector_store %arg12[%c0_45, %c0_46], %74 {strides = array<i32>} : memref<16x32xf32, #tpu.memory_space<vmem>>, vector<16x32xf32>,
      %cst_47 = arith.constant 0.000000e+00 : f32
      %76 = vector.broadcast %cst_47 : f32 to vector<1x32xf32>
      %c0_48 = arith.constant 0 : index
      %c0_49 = arith.constant 0 : index
      %77 = vector.load %arg9[%c0_48, %c0_49] : memref<1x32xf32, #tpu.memory_space<vmem>>, vector<1x32xf32>
      tpu.vector_store %arg9[%c0_48, %c0_49], %76 {strides = array<i32>} : memref<1x32xf32, #tpu.memory_space<vmem>>, vector<1x32xf32>,
      %cst_50 = arith.constant 0.000000e+00 : f32
      %78 = vector.broadcast %cst_50 : f32 to vector<1x32xf32>
      %c0_51 = arith.constant 0 : index
      %c0_52 = arith.constant 0 : index
      %79 = vector.load %arg10[%c0_51, %c0_52] : memref<1x32xf32, #tpu.memory_space<vmem>>, vector<1x32xf32>
      tpu.vector_store %arg10[%c0_51, %c0_52], %78 {strides = array<i32>} : memref<1x32xf32, #tpu.memory_space<vmem>>, vector<1x32xf32>,
    } else {
    }
    %c0 = arith.constant 0 : index
    %c0_1 = arith.constant 0 : index
    %c0_2 = arith.constant 0 : index
    %3 = vector.load %arg1[%c0, %c0_1, %c0_2] : memref<1x16x16xbf16, #tpu.memory_space<vmem>>, vector<1x16x16xbf16>
    %4 = vector.shape_cast %3 : vector<1x16x16xbf16> to vector<16x16xbf16>
    %c0_3 = arith.constant 0 : index
    %c0_4 = arith.constant 0 : index
    %c0_5 = arith.constant 0 : index
    %5 = vector.load %arg2[%c0_3, %c0_4, %c0_5] : memref<1x16x128xf32, #tpu.memory_space<vmem>>, vector<1x16x128xf32>
    %6 = vector.shape_cast %5 : vector<1x16x128xf32> to vector<16x128xf32>
    %c0_6 = arith.constant 0 : index
    %c0_7 = arith.constant 0 : index
    %7 = vector.load %arg11[%c0_6, %c0_7] : memref<16x32xf32, #tpu.memory_space<vmem>>, vector<16x32xf32>
    %c0_8 = arith.constant 0 : index
    %c0_9 = arith.constant 0 : index
    %8 = vector.load %arg12[%c0_8, %c0_9] : memref<16x32xf32, #tpu.memory_space<vmem>>, vector<16x32xf32>
    %9 = arith.truncf %7 : vector<16x32xf32> to vector<16x32xbf16>
    %c0_10 = arith.constant 0 : index
    %c0_11 = arith.constant 0 : index
    %10 = vector.load %arg3[%c0_10, %c0_11] : memref<32x128xbf16, #tpu.memory_space<vmem>>, vector<32x128xbf16>
    %cst = arith.constant dense<0.000000e+00> : vector<16x128xf32>
    %11 = tpu.matmul %9, %10, %cst {dimension_numbers = #tpu.dot_dimension_numbers<[1], [0], [0], [1], [0, 0, 1, 1], [], []>} : vector<16x32xbf16>, vector<32x128xbf16>, vector<16x128xf32> -> vector<16x128xf32>
    %12 = arith.addf %6, %11 : vector<16x128xf32>
    %13 = arith.truncf %12 : vector<16x128xf32> to vector<16x128xbf16>
    %cst_12 = arith.constant dense<0.000000e+00> : vector<16x128xf32>
    %14 = tpu.matmul %4, %13, %cst_12 {dimension_numbers = #tpu.dot_dimension_numbers<[1], [0], [0], [1], [0, 0, 1, 1], [], []>} : vector<16x16xbf16>, vector<16x128xbf16>, vector<16x128xf32> -> vector<16x128xf32>
    %c0_13 = arith.constant 0 : index
    %c0_14 = arith.constant 0 : index
    %15 = vector.load %arg4[%c0_13, %c0_14] : memref<1x128xf32, #tpu.memory_space<vmem>>, vector<1x128xf32>
    %16 = vector.broadcast %15 : vector<1x128xf32> to vector<16x128xf32>
    %17 = arith.addf %14, %16 : vector<16x128xf32>
    %18 = vector.extract_strided_slice %17 {offsets = [0, 0], sizes = [16, 32], strides = [1, 1]} : vector<16x128xf32> to vector<16x32xf32>
    %c0_15 = arith.constant 0 : index
    %c0_16 = arith.constant 0 : index
    %19 = vector.load %arg5[%c0_15, %c0_16] : memref<1x32xf32, #tpu.memory_space<vmem>>, vector<1x32xf32>
    %20 = vector.broadcast %19 : vector<1x32xf32> to vector<16x32xf32>
    %21 = arith.mulf %20, %8 : vector<16x32xf32>
    %22 = arith.addf %18, %21 : vector<16x32xf32>
    %23 = arith.negf %22 : vector<16x32xf32>
    %24 = math.exp %23 : vector<16x32xf32>
    %cst_17 = arith.constant 1.000000e+00 : f32
    %25 = vector.broadcast %cst_17 : f32 to vector<16x32xf32>
    %26 = arith.addf %25, %24 : vector<16x32xf32>
    %27 = arith.divf %25, %26 : vector<16x32xf32>
    %28 = vector.extract_strided_slice %17 {offsets = [0, 32], sizes = [16, 32], strides = [1, 1]} : vector<16x128xf32> to vector<16x32xf32>
    %c0_18 = arith.constant 0 : index
    %c0_19 = arith.constant 0 : index
    %29 = vector.load %arg6[%c0_18, %c0_19] : memref<1x32xf32, #tpu.memory_space<vmem>>, vector<1x32xf32>
    %30 = vector.broadcast %29 : vector<1x32xf32> to vector<16x32xf32>
    %31 = arith.mulf %30, %8 : vector<16x32xf32>
    %32 = arith.addf %28, %31 : vector<16x32xf32>
    %33 = arith.negf %32 : vector<16x32xf32>
    %34 = math.exp %33 : vector<16x32xf32>
    %cst_20 = arith.constant 1.000000e+00 : f32
    %35 = vector.broadcast %cst_20 : f32 to vector<16x32xf32>
    %36 = arith.addf %35, %34 : vector<16x32xf32>
    %37 = arith.divf %35, %36 : vector<16x32xf32>
    %38 = vector.extract_strided_slice %17 {offsets = [0, 64], sizes = [16, 32], strides = [1, 1]} : vector<16x128xf32> to vector<16x32xf32>
    %39 = math.tanh %38 : vector<16x32xf32>
    %40 = arith.mulf %37, %8 : vector<16x32xf32>
    %41 = arith.mulf %27, %39 : vector<16x32xf32>
    %42 = arith.addf %40, %41 : vector<16x32xf32>
    %43 = vector.extract_strided_slice %17 {offsets = [0, 96], sizes = [16, 32], strides = [1, 1]} : vector<16x128xf32> to vector<16x32xf32>
    %c0_21 = arith.constant 0 : index
    %c0_22 = arith.constant 0 : index
    %44 = vector.load %arg7[%c0_21, %c0_22] : memref<1x32xf32, #tpu.memory_space<vmem>>, vector<1x32xf32>
    %45 = vector.broadcast %44 : vector<1x32xf32> to vector<16x32xf32>
    %46 = arith.mulf %45, %42 : vector<16x32xf32>
    %47 = arith.addf %43, %46 : vector<16x32xf32>
    %48 = arith.negf %47 : vector<16x32xf32>
    %49 = math.exp %48 : vector<16x32xf32>
    %cst_23 = arith.constant 1.000000e+00 : f32
    %50 = vector.broadcast %cst_23 : f32 to vector<16x32xf32>
    %51 = arith.addf %50, %49 : vector<16x32xf32>
    %52 = arith.divf %50, %51 : vector<16x32xf32>
    %53 = math.tanh %42 : vector<16x32xf32>
    %54 = arith.mulf %52, %53 : vector<16x32xf32>
    %c0_24 = arith.constant 0 : index
    %c0_25 = arith.constant 0 : index
    %55 = vector.load %arg11[%c0_24, %c0_25] : memref<16x32xf32, #tpu.memory_space<vmem>>, vector<16x32xf32>
    tpu.vector_store %arg11[%c0_24, %c0_25], %54 {strides = array<i32>} : memref<16x32xf32, #tpu.memory_space<vmem>>, vector<16x32xf32>,
    %c0_26 = arith.constant 0 : index
    %c0_27 = arith.constant 0 : index
    %56 = vector.load %arg12[%c0_26, %c0_27] : memref<16x32xf32, #tpu.memory_space<vmem>>, vector<16x32xf32>
    tpu.vector_store %arg12[%c0_26, %c0_27], %42 {strides = array<i32>} : memref<16x32xf32, #tpu.memory_space<vmem>>, vector<16x32xf32>,
    %57 = arith.truncf %54 : vector<16x32xf32> to vector<16x32xbf16>
    %c0_28 = arith.constant 0 : index
    %c0_29 = arith.constant 0 : index
    %c0_30 = arith.constant 0 : index
    %58 = vector.load %arg8[%c0_28, %c0_29, %c0_30] : memref<1x16x32xbf16, #tpu.memory_space<vmem>>, vector<1x16x32xbf16>
    %59 = vector.shape_cast %58 : vector<1x16x32xbf16> to vector<16x32xbf16>
    %60 = vector.shape_cast %57 : vector<16x32xbf16> to vector<1x16x32xbf16>
    tpu.vector_store %arg8[%c0_28, %c0_29, %c0_30], %60 {strides = array<i32>} : memref<1x16x32xbf16, #tpu.memory_space<vmem>>, vector<1x16x32xbf16>,
    %c0_31 = arith.constant 0 : index
    %c0_32 = arith.constant 0 : index
    %61 = vector.load %arg9[%c0_31, %c0_32] : memref<1x32xf32, #tpu.memory_space<vmem>>, vector<1x32xf32>
    %cst_33 = arith.constant dense<0.000000e+00> : vector<32xf32>
    %62 = vector.multi_reduction <add>, %54, %cst_33 [0] : vector<16x32xf32> to vector<32xf32>
    %63 = vector.shape_cast %62 : vector<32xf32> to vector<1x32xf32>
    %64 = arith.addf %61, %63 : vector<1x32xf32>
    %c0_34 = arith.constant 0 : index
    %c0_35 = arith.constant 0 : index
    %65 = vector.load %arg9[%c0_34, %c0_35] : memref<1x32xf32, #tpu.memory_space<vmem>>, vector<1x32xf32>
    tpu.vector_store %arg9[%c0_34, %c0_35], %64 {strides = array<i32>} : memref<1x32xf32, #tpu.memory_space<vmem>>, vector<1x32xf32>,
    %c0_36 = arith.constant 0 : index
    %c0_37 = arith.constant 0 : index
    %66 = vector.load %arg10[%c0_36, %c0_37] : memref<1x32xf32, #tpu.memory_space<vmem>>, vector<1x32xf32>
    %67 = arith.mulf %54, %54 : vector<16x32xf32>
    %cst_38 = arith.constant dense<0.000000e+00> : vector<32xf32>
    %68 = vector.multi_reduction <add>, %67, %cst_38 [0] : vector<16x32xf32> to vector<32xf32>
    %69 = vector.shape_cast %68 : vector<32xf32> to vector<1x32xf32>
    %70 = arith.addf %66, %69 : vector<1x32xf32>
    %c0_39 = arith.constant 0 : index
    %c0_40 = arith.constant 0 : index
    %71 = vector.load %arg10[%c0_39, %c0_40] : memref<1x32xf32, #tpu.memory_space<vmem>>, vector<1x32xf32>
    tpu.vector_store %arg10[%c0_39, %c0_40], %70 {strides = array<i32>} : memref<1x32xf32, #tpu.memory_space<vmem>>, vector<1x32xf32>,
    return
  }
  func.func @transform_0(%arg0: i32) -> (i32, i32, i32) {
    %c0_i32 = arith.constant 0 : i32
    %c0_i32_0 = arith.constant 0 : i32
    %c0_i32_1 = arith.constant 0 : i32
    return %arg0, %c0_i32, %c0_i32_0 : i32, i32, i32
  }
  func.func @transform_1(%arg0: i32) -> (i32, i32, i32) {
    %c0_i32 = arith.constant 0 : i32
    %c0_i32_0 = arith.constant 0 : i32
    %c0_i32_1 = arith.constant 0 : i32
    return %arg0, %c0_i32, %c0_i32_0 : i32, i32, i32
  }
  func.func @transform_2(%arg0: i32) -> (i32, i32) {
    %c0_i32 = arith.constant 0 : i32
    %c0_i32_0 = arith.constant 0 : i32
    %c0_i32_1 = arith.constant 0 : i32
    return %c0_i32, %c0_i32_0 : i32, i32
  }
  func.func @transform_3(%arg0: i32) -> (i32, i32) {
    %c0_i32 = arith.constant 0 : i32
    %c0_i32_0 = arith.constant 0 : i32
    %c0_i32_1 = arith.constant 0 : i32
    return %c0_i32, %c0_i32_0 : i32, i32
  }
  func.func @transform_4(%arg0: i32) -> (i32, i32) {
    %c0_i32 = arith.constant 0 : i32
    %c0_i32_0 = arith.constant 0 : i32
    %c0_i32_1 = arith.constant 0 : i32
    return %c0_i32, %c0_i32_0 : i32, i32
  }
  func.func @transform_5(%arg0: i32) -> (i32, i32) {
    %c0_i32 = arith.constant 0 : i32
    %c0_i32_0 = arith.constant 0 : i32
    %c0_i32_1 = arith.constant 0 : i32
    return %c0_i32, %c0_i32_0 : i32, i32
  }
  func.func @transform_6(%arg0: i32) -> (i32, i32) {
    %c0_i32 = arith.constant 0 : i32
    %c0_i32_0 = arith.constant 0 : i32
    %c0_i32_1 = arith.constant 0 : i32
    return %c0_i32, %c0_i32_0 : i32, i32
  }
  func.func @transform_7(%arg0: i32) -> (i32, i32, i32) {
    %c0_i32 = arith.constant 0 : i32
    %c0_i32_0 = arith.constant 0 : i32
    %c0_i32_1 = arith.constant 0 : i32
    return %arg0, %c0_i32, %c0_i32_0 : i32, i32, i32
  }
  func.func @transform_8(%arg0: i32) -> (i32, i32) {
    %c0_i32 = arith.constant 0 : i32
    %c0_i32_0 = arith.constant 0 : i32
    %c0_i32_1 = arith.constant 0 : i32
    return %c0_i32, %c0_i32_0 : i32, i32
  }
  func.func @transform_9(%arg0: i32) -> (i32, i32) {
    %c0_i32 = arith.constant 0 : i32
    %c0_i32_0 = arith.constant 0 : i32
    %c0_i32_1 = arith.constant 0 : i32
    return %c0_i32, %c0_i32_0 : i32, i32
  }
}

module attributes {stable_mosaic.version = 11 : i64} {
  func.func @bn_relu_kernel(%arg0: i32, %arg1: memref<1x16x32xbf16, #tpu.memory_space<vmem>>, %arg2: memref<1x32xf32, #tpu.memory_space<vmem>>, %arg3: memref<1x32xf32, #tpu.memory_space<vmem>>, %arg4: memref<1x16x32xf32, #tpu.memory_space<vmem>>) attributes {dimension_semantics = [#tpu.dimension_semantics<parallel>], iteration_bounds = array<i64: 4>, scalar_prefetch = 0 : i64, scratch_operands = 0 : i64, tpu.core_type = #tpu.core_type<tc>, window_params = [{transform_indices = @transform_0, window_bounds = array<i64: 1, 16, 32>}, {pipeline_mode = #tpu.pipeline_mode<synchronous>, transform_indices = @transform_1, window_bounds = array<i64: 1, 32>}, {pipeline_mode = #tpu.pipeline_mode<synchronous>, transform_indices = @transform_2, window_bounds = array<i64: 1, 32>}, {transform_indices = @transform_3, window_bounds = array<i64: 1, 16, 32>}]} {
    %c0 = arith.constant 0 : index
    %c0_0 = arith.constant 0 : index
    %c0_1 = arith.constant 0 : index
    %0 = vector.load %arg1[%c0, %c0_0, %c0_1] : memref<1x16x32xbf16, #tpu.memory_space<vmem>>, vector<1x16x32xbf16>
    %1 = arith.extf %0 : vector<1x16x32xbf16> to vector<1x16x32xf32>
    %c0_2 = arith.constant 0 : index
    %c0_3 = arith.constant 0 : index
    %2 = vector.load %arg2[%c0_2, %c0_3] : memref<1x32xf32, #tpu.memory_space<vmem>>, vector<1x32xf32>
    %3 = vector.shape_cast %2 : vector<1x32xf32> to vector<1x1x32xf32>
    %4 = vector.broadcast %3 : vector<1x1x32xf32> to vector<1x16x32xf32>
    %5 = arith.mulf %1, %4 : vector<1x16x32xf32>
    %c0_4 = arith.constant 0 : index
    %c0_5 = arith.constant 0 : index
    %6 = vector.load %arg3[%c0_4, %c0_5] : memref<1x32xf32, #tpu.memory_space<vmem>>, vector<1x32xf32>
    %7 = vector.shape_cast %6 : vector<1x32xf32> to vector<1x1x32xf32>
    %8 = vector.broadcast %7 : vector<1x1x32xf32> to vector<1x16x32xf32>
    %9 = arith.addf %5, %8 : vector<1x16x32xf32>
    %cst = arith.constant 0.000000e+00 : f32
    %10 = vector.broadcast %cst : f32 to vector<1x16x32xf32>
    %11 = arith.maximumf %9, %10 : vector<1x16x32xf32>
    %c0_6 = arith.constant 0 : index
    %c0_7 = arith.constant 0 : index
    %c0_8 = arith.constant 0 : index
    %12 = vector.load %arg4[%c0_6, %c0_7, %c0_8] : memref<1x16x32xf32, #tpu.memory_space<vmem>>, vector<1x16x32xf32>
    tpu.vector_store %arg4[%c0_6, %c0_7, %c0_8], %11 {strides = array<i32>} : memref<1x16x32xf32, #tpu.memory_space<vmem>>, vector<1x16x32xf32>,
    return
  }
  func.func @transform_0(%arg0: i32) -> (i32, i32, i32) {
    %c0_i32 = arith.constant 0 : i32
    %c0_i32_0 = arith.constant 0 : i32
    %c0_i32_1 = arith.constant 0 : i32
    return %arg0, %c0_i32, %c0_i32_0 : i32, i32, i32
  }
  func.func @transform_1(%arg0: i32) -> (i32, i32) {
    %c0_i32 = arith.constant 0 : i32
    %c0_i32_0 = arith.constant 0 : i32
    %c0_i32_1 = arith.constant 0 : i32
    return %c0_i32, %c0_i32_0 : i32, i32
  }
  func.func @transform_2(%arg0: i32) -> (i32, i32) {
    %c0_i32 = arith.constant 0 : i32
    %c0_i32_0 = arith.constant 0 : i32
    %c0_i32_1 = arith.constant 0 : i32
    return %c0_i32, %c0_i32_0 : i32, i32
  }
  func.func @transform_3(%arg0: i32) -> (i32, i32, i32) {
    %c0_i32 = arith.constant 0 : i32
    %c0_i32_0 = arith.constant 0 : i32
    %c0_i32_1 = arith.constant 0 : i32
    return %arg0, %c0_i32, %c0_i32_0 : i32, i32, i32
  }
}

module attributes {stable_mosaic.version = 11 : i64} {
  func.func @bn_relu_proj_kernel(%arg0: i32, %arg1: memref<64x32xbf16, #tpu.memory_space<vmem>>, %arg2: memref<1x32xf32, #tpu.memory_space<vmem>>, %arg3: memref<1x32xf32, #tpu.memory_space<vmem>>, %arg4: memref<32x128xbf16, #tpu.memory_space<vmem>>, %arg5: memref<64x128xf32, #tpu.memory_space<vmem>>) attributes {dimension_semantics = [#tpu.dimension_semantics<parallel>], iteration_bounds = array<i64: 1>, scalar_prefetch = 0 : i64, scratch_operands = 0 : i64, tpu.core_type = #tpu.core_type<tc>, window_params = [{transform_indices = @transform_0, window_bounds = array<i64: 64, 32>}, {pipeline_mode = #tpu.pipeline_mode<synchronous>, transform_indices = @transform_1, window_bounds = array<i64: 1, 32>}, {pipeline_mode = #tpu.pipeline_mode<synchronous>, transform_indices = @transform_2, window_bounds = array<i64: 1, 32>}, {pipeline_mode = #tpu.pipeline_mode<synchronous>, transform_indices = @transform_3, window_bounds = array<i64: 32, 128>}, {transform_indices = @transform_4, window_bounds = array<i64: 64, 128>}]} {
    %c0 = arith.constant 0 : index
    %c0_0 = arith.constant 0 : index
    %0 = vector.load %arg1[%c0, %c0_0] : memref<64x32xbf16, #tpu.memory_space<vmem>>, vector<64x32xbf16>
    %1 = arith.extf %0 : vector<64x32xbf16> to vector<64x32xf32>
    %c0_1 = arith.constant 0 : index
    %c0_2 = arith.constant 0 : index
    %2 = vector.load %arg2[%c0_1, %c0_2] : memref<1x32xf32, #tpu.memory_space<vmem>>, vector<1x32xf32>
    %3 = vector.broadcast %2 : vector<1x32xf32> to vector<64x32xf32>
    %4 = arith.mulf %1, %3 : vector<64x32xf32>
    %c0_3 = arith.constant 0 : index
    %c0_4 = arith.constant 0 : index
    %5 = vector.load %arg3[%c0_3, %c0_4] : memref<1x32xf32, #tpu.memory_space<vmem>>, vector<1x32xf32>
    %6 = vector.broadcast %5 : vector<1x32xf32> to vector<64x32xf32>
    %7 = arith.addf %4, %6 : vector<64x32xf32>
    %cst = arith.constant 0.000000e+00 : f32
    %8 = vector.broadcast %cst : f32 to vector<64x32xf32>
    %9 = arith.maximumf %7, %8 : vector<64x32xf32>
    %10 = arith.truncf %9 : vector<64x32xf32> to vector<64x32xbf16>
    %c0_5 = arith.constant 0 : index
    %c0_6 = arith.constant 0 : index
    %11 = vector.load %arg4[%c0_5, %c0_6] : memref<32x128xbf16, #tpu.memory_space<vmem>>, vector<32x128xbf16>
    %cst_7 = arith.constant dense<0.000000e+00> : vector<64x128xf32>
    %12 = tpu.matmul %10, %11, %cst_7 {dimension_numbers = #tpu.dot_dimension_numbers<[1], [0], [0], [1], [0, 0, 1, 1], [], []>} : vector<64x32xbf16>, vector<32x128xbf16>, vector<64x128xf32> -> vector<64x128xf32>
    %c0_8 = arith.constant 0 : index
    %c0_9 = arith.constant 0 : index
    %13 = vector.load %arg5[%c0_8, %c0_9] : memref<64x128xf32, #tpu.memory_space<vmem>>, vector<64x128xf32>
    tpu.vector_store %arg5[%c0_8, %c0_9], %12 {strides = array<i32>} : memref<64x128xf32, #tpu.memory_space<vmem>>, vector<64x128xf32>,
    return
  }
  func.func @transform_0(%arg0: i32) -> (i32, i32) {
    %c0_i32 = arith.constant 0 : i32
    %c0_i32_0 = arith.constant 0 : i32
    return %arg0, %c0_i32 : i32, i32
  }
  func.func @transform_1(%arg0: i32) -> (i32, i32) {
    %c0_i32 = arith.constant 0 : i32
    %c0_i32_0 = arith.constant 0 : i32
    %c0_i32_1 = arith.constant 0 : i32
    return %c0_i32, %c0_i32_0 : i32, i32
  }
  func.func @transform_2(%arg0: i32) -> (i32, i32) {
    %c0_i32 = arith.constant 0 : i32
    %c0_i32_0 = arith.constant 0 : i32
    %c0_i32_1 = arith.constant 0 : i32
    return %c0_i32, %c0_i32_0 : i32, i32
  }
  func.func @transform_3(%arg0: i32) -> (i32, i32) {
    %c0_i32 = arith.constant 0 : i32
    %c0_i32_0 = arith.constant 0 : i32
    %c0_i32_1 = arith.constant 0 : i32
    return %c0_i32, %c0_i32_0 : i32, i32
  }
  func.func @transform_4(%arg0: i32) -> (i32, i32) {
    %c0_i32 = arith.constant 0 : i32
    %c0_i32_0 = arith.constant 0 : i32
    return %arg0, %c0_i32 : i32, i32
  }
}

</mosaic_0001>

<bundles_post_ra>
// kernel: egcn_forward.13
= control target key start
LH: loop header
LB: loop body
LE: loop exit
PB: predicated region body
PF: predicated region fallthrough
CT: control target
= control target key end

     0   :  { %s308_s12 = smov 0   ;;  %s331_s0 = inlined_call_operand.vmem [shape: bf16[4,16,32], index: 0, kind: input, shape index: {}]   ;;  %s332_s1 = inlined_call_operand.vmem [shape: f32[1,32], index: 1, kind: input, shape index: {}]   ;;  %s333_s2 = inlined_call_operand.vmem [shape: f32[1,32], index: 2, kind: input, shape index: {}]   ;;  %s334_s3 = inlined_call_operand.vmem [shape: f32[4,16,32], index: 3, kind: output, shape index: {}]  }
   0x1 LB: > { %s253_s13 = sadd.s32 4294967295, %s286_s12   ;;  %p257_p0 = scmp.ge.s32.totalorder %s286_s12, 1  ;;  %s286_s12 = sphi %s308_s12, %s13_s12  }
   0x2   : > { %p137_p1 = scmp.lt.s32.totalorder %s286_s12, 5 }
   0x4   : > { %p138_p2 = pnand %p257_p0, %p137_p1 }
   0x5   : > { %p161_p3 = scmp.lt.s32.totalorder (!%p138_p2), %s253_s13, 3  ;;  %v262_v1 = vld [vmem:[%s332_s1] ss:$0 sm:$0xff] (!%p138_p2)  ;;  %vm195_vm0 = vcmask (!%p138_p2), 261120  }
   0x6   : > { %141 = sbr.rel (%p138_p2) target bundleno = 26 (0x1a), region = 32  ;;  %v263_v4 = vld [vmem:[%s333_s2] ss:$0 sm:$0xff] (!%p138_p2) }
   0xd   : > { %s336_s13 = smov (!%p161_p3, %s253_s13), 3 }
   0xe   : > { %s266_s14 = sshll.u32 %s336_s13, 3  ;;  %s267_s22 = sshll.u32 %s336_s13, 4 }
   0xf   : > { %s165_s17 = scalar_lea.vmem %s331_s0, %s266_s14  ;;  %s170_s25 = scalar_lea.vmem %s334_s3, %s267_s22 }
  0x10   : > { %v269_v0 = vld [vmem:[%s165_s17] sm:$0xff]  }
  0x11   : > { %v270_v2 = vunpack.c.l.bf16 %v269_v0  ;;  %v271_v3 = vunpack.c.h.bf16 %v269_v0 }
  0x13   : > { %v182_v5 = vmul.f32 %v270_v2, %v262_v1  ;;  %v183_v6 = vmul.f32 %v271_v3, %v262_v1 }
  0x15   : > { %v191_v7 = vadd.f32 %v263_v4, %v182_v5  ;;  %v192_v8 = vadd.f32 %v263_v4, %v183_v6 }
  0x17   : > { %v193_v9 = vmax.f32 %v191_v7, 0.0  ;;  %v194_v10 = vmax.f32 %v192_v8, 0.0 }
  0x19   : > { %196 = vst.msk [vmem:[%s170_s25] sm:$0xff] %vm195_vm0, %v193_v9  ;;  %197 = vst.msk [vmem:[%s170_s25 + $0x8] sm:$0xff] %vm195_vm0, %v194_v10 }
  0x1a PF: > { %s13_s12 = sadd.s32 1, %s286_s12  }
  0x1b   : > { %p10_p4 = scmp.ge.s32.totalorder %s13_s12, 6  }
  0x1d   :  { %12 = sbr.rel (!%p10_p4) target bundleno = 1 (0x1), region = 62 }

// kernel: egcn_forward.7
= control target key start
LH: loop header
LB: loop body
LE: loop exit
PB: predicated region body
PF: predicated region fallthrough
CT: control target
= control target key end

     0   :  { %vm46_vm0 = vcmask 261120   ;;  %s249_s1 = inlined_call_operand.vmem [shape: f32[1,32], index: 1, kind: input, shape index: {}]   ;;  %s250_s2 = inlined_call_operand.vmem [shape: f32[1,32], index: 2, kind: input, shape index: {}]   ;;  %s251_s3 = inlined_call_operand.vmem [shape: bf16[32,128], index: 3, kind: input, shape index: {}]   ;;  %s252_s0 = inlined_call_operand.vmem [shape: f32[64,32], index: 0, kind: input, shape index: {}]   ;;  %s253_s4 = inlined_call_operand.vmem [shape: f32[64,128], index: 4, kind: output, shape index: {}]  }
   0x1   :  { %v164_v0 = vld [vmem:[%s251_s3] sm:$0xff]   ;;  %v165_v1 = vld [vmem:[%s251_s3 + $0x8] sm:$0xff]   ;;  %v20_v7 = vld [vmem:[%s252_s0 + $0x10] sm:$0xff] }
   0x2   :  { %148 = vmatprep.subr.bf16.mxu0 %v164_v0  ;;  %160 = vmatprep.subr.bf16.mxu1 %v164_v0  ;;  %v18_v2 = vld [vmem:[%s252_s0] sm:$0xff]  ;;  %v19_v3 = vld [vmem:[%s252_s0 + $0x8] sm:$0xff]  ;;  %v21_v8 = vld [vmem:[%s252_s0 + $0x18] sm:$0xff] }
   0x3   :  { %v22_v4 = vld [vmem:[%s252_s0 + $0x20] sm:$0xff]  ;;  %149 = vmatpush3.bf16.msra.mxu0 %v164_v0  ;;  %162 = vmatpush3.bf16.msra.mxu1 %v164_v0  ;;  %v26_v5 = vpack.c.bf16 %v19_v3, %v18_v2  ;;  %v23_v6 = vld [vmem:[%s252_s0 + $0x28] sm:$0xff]  ;;  %v24_v10 = vld [vmem:[%s252_s0 + $0x30] sm:$0xff]  ;;  %v27_v12 = vpack.c.bf16 %v21_v8, %v20_v7 }
   0x4   :  { %150 = vmatprep.subr.bf16.mxu0 %v165_v1  ;;  %161 = vmatprep.subr.bf16.mxu1 %v165_v1  ;;  %v28_v9 = vpack.c.bf16 %v23_v6, %v22_v4  ;;  %v25_v11 = vld [vmem:[%s252_s0 + $0x38] sm:$0xff] }
   0x5   :  { %152 = vmatprep.mubr.msk.bf16.mxu0 %vm46_vm0, %v26_v5  ;;  %v29_v13 = vpack.c.bf16 %v25_v11, %v24_v10 }
   0x6   :  { %156 = vmatprep.mubr.msk.bf16.mxu1 %vm46_vm0, %v28_v9 }
   0x7   :  { %151 = vmatpush3.bf16.msra.mxu0 %v165_v1  ;;  %163 = vmatpush3.bf16.msra.mxu1 %v165_v1 }
   0xa   :  { %153 = vmatmul.mubr.msk.bf16.vlgmr.msra.gmra.mrb[0].mxu0 %vm46_vm0, %v27_v12  ;;  %157 = vmatmul.mubr.msk.bf16.vlgmr.msra.gmra.mrb[0].mxu1 %vm46_vm0, %v29_v13 }
  0xdd   :  { %v154_v14 = vpop.f32.mrb[0].mxu0  ;;  %v158_v15 = vpop.f32.mrb[0].mxu1 }
  0xde   :  { %126 = vst [vmem:[%s253_s4 + $0x10] sm:$0xff] %v154_v14  ;;  %130 = vst [vmem:[%s253_s4 + $0x30] sm:$0xff] %v158_v15  ;;  %v93_v16 = vpop.f32.mrb[1].mxu0  ;;  %v109_v17 = vpop.f32.mrb[1].mxu1 }
  0xdf   :  { %124 = vst [vmem:[%s253_s4] sm:$0xff] %v93_v16  ;;  %128 = vst [vmem:[%s253_s4 + $0x20] sm:$0xff] %v109_v17  ;;  %v155_v18 = vpop.f32.mrb[2].mxu0  ;;  %v159_v19 = vpop.f32.mrb[2].mxu1 }
  0xe0   :  { %127 = vst [vmem:[%s253_s4 + $0x18] sm:$0xff] %v155_v18  ;;  %131 = vst [vmem:[%s253_s4 + $0x38] sm:$0xff] %v159_v19  ;;  %v96_v20 = vpop.f32.mrb[3].mxu0  ;;  %v112_v21 = vpop.f32.mrb[3].mxu1 }
  0xe1   :  { %125 = vst [vmem:[%s253_s4 + $0x8] sm:$0xff] %v96_v20  ;;  %129 = vst [vmem:[%s253_s4 + $0x28] sm:$0xff] %v112_v21 }

// kernel: egcn_forward.8
= control target key start
LH: loop header
LB: loop body
LE: loop exit
PB: predicated region body
PF: predicated region fallthrough
CT: control target
= control target key end

     0   :  { %s968_s30 = smov 0   ;;  %s1068_s0 = inlined_call_operand.vmem [shape: bf16[4,16,16], index: 0, kind: input, shape index: {}]   ;;  %s1069_s1 = inlined_call_operand.vmem [shape: f32[4,16,128], index: 1, kind: input, shape index: {}]   ;;  %s1070_s2 = inlined_call_operand.vmem [shape: bf16[32,128], index: 2, kind: input, shape index: {}]   ;;  %s1071_s3 = inlined_call_operand.vmem [shape: f32[1,128], index: 3, kind: input, shape index: {}]   ;;  %s1072_s4 = inlined_call_operand.vmem [shape: f32[1,32], index: 4, kind: input, shape index: {}]   ;;  %s1073_s5 = inlined_call_operand.vmem [shape: f32[1,32], index: 5, kind: input, shape index: {}]   ;;  %s1074_s6 = inlined_call_operand.vmem [shape: f32[1,32], index: 6, kind: input, shape index: {}]   ;;  %s1075_s7 = inlined_call_operand.vmem [shape: bf16[4,16,32], index: 7, kind: output, shape index: {0}]   ;;  %s1076_s8 = inlined_call_operand.vmem [shape: f32[1,32], index: 8, kind: output, shape index: {1}]   ;;  %s1077_s9 = inlined_call_operand.vmem [shape: f32[1,32], index: 9, kind: output, shape index: {2}]  }
   0x1 LB: > { %s798_s10 = sadd.s32 4294967295, %s909_s30   ;;  %p802_p0 = scmp.ge.s32.totalorder %s909_s30, 1  ;;  %s909_s30 = sphi %s968_s30, %s20_s30  }
   0x2   : > { %p292_p1 = scmp.lt.s32.totalorder %s909_s30, 5 }
   0x4   : > { %p293_p2 = pnand %p802_p0, %p292_p1 }
   0x5   : > { %p333_p3 = scmp.lt.s32.totalorder (!%p293_p2), %s798_s10, 3  ;;  %p809_p4 = scmp.ne.s32.totalorder (!%p293_p2), %s798_s10, 0 }
   0x6   : > { %296 = sbr.rel (%p293_p2) target bundleno = 1117 (0x45d), region = 48 }
   0xd   : > { %s334_s11 = scalar_select %p333_p3, %s798_s10, 3 }
   0xe   : > { %352 = sbr.rel (%p809_p4) target bundleno = 21 (0x15), region = 52  ;;  %vm353_vm0 = vcmask (!%p809_p4), 261120   ;;  %vm358_vm1 = vcmask (!%p809_p4), 253952   ;;  %v911_v0 = vmov (!%p809_p4), 0.0  }
   0xf   : > { %s829_s12 = sshll.u32 %s334_s11, 3  ;;  %s830_s13 = sshll.u32 %s334_s11, 4  ;;  %354 = vst.msk [vmem:[#allocation2] sm:$0xff] (!%p809_p4), %vm353_vm0, %v911_v0  ;;  %355 = vst.msk [vmem:[#allocation2 + $0x8] sm:$0xff] (!%p809_p4), %vm353_vm0, %v911_v0 }
  0x10   : > { %s979_s16 = scalar_lea.vmem %s1068_s0, %s829_s12  ;;  %s984_s19 = scalar_lea.vmem %s1069_s1, %s830_s13  ;;  %356 = vst.msk [vmem:[#allocation3] sm:$0xff] (!%p809_p4), %vm353_vm0, %v911_v0  ;;  %357 = vst.msk [vmem:[#allocation3 + $0x8] sm:$0xff] (!%p809_p4), %vm353_vm0, %v911_v0 }
  0x11   : > { %s989_s22 = scalar_lea.vmem %s1075_s7, %s829_s12  ;;  %359 = vst.msk [vmem:[%s1076_s8] sm:$0x1] (!%p809_p4), %vm358_vm1, %v911_v0  ;;  %360 = vst.msk [vmem:[%s1077_s9] sm:$0x1] (!%p809_p4), %vm358_vm1, %v911_v0 }
  0x15 PF: > { %v868_v1 = vld [vmem:[%s1070_s2] sm:$0xff]   ;;  %v912_v2 = vmov 0.0   ;;  %v869_v3 = vld [vmem:[%s1070_s2 + $0x8] sm:$0xff]   ;;  %vm913_vm2 = vmmov 0   ;;  %vm386_vm3 = vcmask 261120   ;;  %s914_s13 = smov 32  }
  0x16   : > { %839 = vmatprep.subr.bf16.mxu0 %v912_v2  ;;  %847 = vmatprep.subr.bf16.mxu1 %v912_v2  ;;  %v365_v4 = vld [vmem:[#allocation2] sm:$0xff]  ;;  %v366_v5 = vld [vmem:[#allocation2 + $0x8] sm:$0xff]  ;;  %vm446_vm4 = vcmask 130048   ;;  %vm656_vm5 = vcmask 1048320   ;;  %vm685_vm6 = vcmask 253952   ;;  %vm652_vm7 = vcmask 257024  }
  0x17   : > { %840 = vmatpush3.bf16.msra.mxu0 %v868_v1  ;;  %843 = vmatprep.mubr.msk.bf16.mxu0 %vm913_vm2, %v912_v2  ;;  %v369_v6 = vpack.c.bf16 %v366_v5, %v365_v4  ;;  %v367_v7 = vld [vmem:[#allocation3] sm:$0xff]  ;;  %v368_v8 = vld [vmem:[#allocation3 + $0x8] sm:$0xff]  ;;  %v819_v9 = vld [vmem:[%s1073_s5] ss:$0 sm:$0xff] }
  0x18   : > { %841 = vmatprep.subr.bf16.mxu0 %v912_v2  ;;  %849 = vmatprep.mubr.msk.bf16.mxu1 %vm913_vm2, %v912_v2  ;;  %v521_v10 = vmul.f32 %v819_v9, %v367_v7  ;;  %v522_v11 = vmul.f32 %v819_v9, %v368_v8  ;;  %v363_v12 = vld [vmem:[%s984_s19] sm:$0xff]  ;;  %v364_v14 = vld [vmem:[%s984_s19 + $0x8] sm:$0xff]  ;;  %s916_s19 = smov 96  }
  0x19   : > { %v870_v21 = vld [vmem:[%s979_s16] sm:$0xff]   ;;  %s915_s16 = smov 64  }
  0x1a   : > { %525 = vrot.lane.b32.xlu1 %v521_v10, %s914_s13  ;;  %v813_v22 = vld [vmem:[%s1071_s3] ss:$0 sm:$0xff] }
  0x1b   : > { %842 = vmatpush3.bf16.msra.mxu0 %v869_v3  ;;  %v816_v31 = vld [vmem:[%s1072_s4] ss:$0 sm:$0xff] }
  0x1c   : > { %v498_v32 = vmul.f32 %v816_v31, %v367_v7  ;;  %v499_v34 = vmul.f32 %v816_v31, %v368_v8  ;;  %v822_v4 = vld [vmem:[%s1074_s6] ss:$0 sm:$0xff] }
  0x1e   : > { %844 = vmatmul.mubr.msk.bf16.vlgmr.msra.gmra.mrb[0].mxu0 %vm386_vm3, %v369_v6  ;;  %527 = vrot.lane.b32.xlu1 %v522_v11, %s914_s13 }
  0x22   : > { %551 = vrot.lane.b32.xlu1 %v368_v8, %s914_s13 }
  0x8c   : > { %v526_v48 = vpop.permute.xlu1 %525 }
  0x90   : > { %v528_v49 = vpop.permute.xlu1 %527 }
  0x94   : > { %v552_v62 = vpop.permute.xlu1 %551 }
  0xf1   : > { %v424_v13 = vpop.f32.mrb[0].mxu0 }
  0xf2   : > { %v845_v15 = vpop.f32.mrb[1].mxu0  ;;  %v431_v17 = vadd.f32 %v424_v13, %v363_v12 }
  0xf3   : > { %v427_v16 = vpop.f32.mrb[2].mxu0 }
  0xf4   : > { %v432_v18 = vadd.f32 %v427_v16, %v364_v14  ;;  %v846_v19 = vpop.f32.mrb[3].mxu0 }
  0xf6   : > { %v433_v20 = vpack.c.bf16 %v432_v18, %v431_v17 }
  0xf8   : > { %848 = vmatpush3.bf16.msra.mxu1 %v433_v20 }
  0xfb   : > { %850 = vmatmul.mubr.msk.bf16.vlgmr.msra.gmra.mrb[0].mxu1 %vm446_vm4, %v870_v21 }
 0x1ce   : > { %v484_v23 = vpop.f32.mrb[0].mxu1 }
 0x1cf   : > { %v1016_v24 = vadd.f32 %v813_v22, %v484_v23  ;;  %v851_v25 = vpop.f32.mrb[1].mxu1 }
 0x1d0   : > { %v487_v26 = vpop.f32.mrb[2].mxu1 }
 0x1d1   : > { %871 = vtanh.f32 %v1016_v24  ;;  %v1019_v27 = vadd.f32 %v813_v22, %v487_v26  ;;  %v852_v28 = vpop.f32.mrb[3].mxu1  ;;  %v500_v33 = vadd.f32 %v498_v32, %v1016_v24  ;;  %v531_v50 = vadd.f32 %v526_v48, %v1016_v24 }
 0x1d3   : > { %873 = vtanh.f32 %v1019_v27  ;;  %v817_v35 = vmul.f32 -1.442695, %v500_v33  ;;  %v501_v36 = vadd.f32 %v499_v34, %v1019_v27  ;;  %v532_v51 = vadd.f32 %v528_v49, %v1019_v27 }
 0x1d4   : > { %v820_v52 = vmul.f32 -1.442695, %v531_v50 }
 0x1d5   : > { %875 = vpow2.f32 %v817_v35  ;;  %v818_v37 = vmul.f32 -1.442695, %v501_v36  ;;  %v821_v53 = vmul.f32 -1.442695, %v532_v51  ;;  %v917_v36 = vmov 1966171168  }
 0x1d7   : > { %877 = vpow2.f32 %v818_v37  ;;  %v668_v37 = vunpack.c.l.s4 %v917_v36 }
 0x1db   : > { %v872_v29 = vpop.eup %871 }
 0x1dc   : > { %559 = vrot.lane.b32.xlu0 %v872_v29, %s915_s16 }
 0x1dd   : > { %v874_v30 = vpop.eup %873 }
 0x1df   : > { %v876_v38 = vpop.eup %875 }
 0x1e0   : > { %561 = vrot.lane.b32.xlu0 %v874_v30, %s915_s16  ;;  %v508_v39 = vadd.f32 1.0, %v876_v38  ;;  %v670_v38 = vlaneseq }
 0x1e1   : > { %v878_v40 = vpop.eup %877 }
 0x1e2   : > { %879 = vrcp.f32 %v508_v39  ;;  %v509_v41 = vadd.f32 1.0, %v878_v40 }
 0x1e4   : > { %549 = vrot.lane.b32.xlu0 %v367_v7, %s914_s13  ;;  %881 = vrcp.f32 %v509_v41 }
 0x1e5   : > { %883 = vpow2.f32 %v820_v52 }
 0x1e6   : > { %885 = vpow2.f32 %v821_v53 }
 0x1ec   : > { %v880_v42 = vpop.eup %879 }
 0x1ee   : > { %v882_v45 = vpop.eup %881 }
 0x1ef   : > { %v884_v54 = vpop.eup %883 }
 0x1f0   : > { %v886_v55 = vpop.eup %885  ;;  %v539_v56 = vadd.f32 1.0, %v884_v54 }
 0x1f1   : > { %v540_v57 = vadd.f32 1.0, %v886_v55 }
 0x1f2   : > { %887 = vrcp.f32 %v539_v56 }
 0x1f3   : > { %889 = vrcp.f32 %v540_v57 }
 0x1fc   : > { %v888_v59 = vpop.eup %887 }
 0x1fd   : > { %v890_v61 = vpop.eup %889 }
 0x1fe   : > { %v556_v1 = vmul.f32 %v890_v61, %v552_v62  ;;  %v655_v61 = vld [vmem:[%s1076_s8] sm:$0x1] }
 0x24e   : > { %v560_v43 = vpop.permute.xlu0 %559 }
 0x24f   : > { %v565_v44 = vmul.f32 %v880_v42, %v560_v43  ;;  %v669_v42 = vunpack.c.0.s8 %v668_v37  ;;  %v671_v43 = vshrl.u32 %v670_v38, 7 }
 0x251   : > { %569 = vrot.lane.b32.xlu0 %v565_v44, %s914_s13  ;;  %v672_v48 = vsub.s32 %v669_v42, %v671_v43 }
 0x252   : > { %v562_v46 = vpop.permute.xlu0 %561 }
 0x253   : > { %v566_v47 = vmul.f32 %v882_v45, %v562_v46 }
 0x255   : > { %571 = vrot.lane.b32.xlu1 %v566_v47, %s914_s13 }
 0x256   : > { %v550_v58 = vpop.permute.xlu0 %549 }
 0x257   : > { %v555_v60 = vmul.f32 %v888_v59, %v550_v58 }
 0x2c3   : > { %v570_v63 = vpop.permute.xlu0 %569 }
 0x2c4   : > { %v575_v0 = vadd.f32 %v570_v63, %v555_v60  ;;  %v687_v63 = vld [vmem:[%s1077_s9] sm:$0x1] }
 0x2c6   : > { %586 = vrot.lane.b32.xlu0 %v575_v0, %s916_s19  ;;  %891 = vtanh.f32 %v575_v0 }
 0x2c7   : > { %v572_v2 = vpop.permute.xlu1 %571 }
 0x2c8   : > { %v576_v3 = vadd.f32 %v572_v2, %v556_v1 }
 0x2ca   : > { %588 = vrot.lane.b32.xlu1 %v576_v3, %s916_s19  ;;  %893 = vtanh.f32 %v576_v3 }
 0x2d0   : > { %v892_v9 = vpop.eup %891 }
 0x2d4   : > { %v894_v10 = vpop.eup %893 }
 0x338   : > { %v587_v5 = vpop.permute.xlu0 %586 }
 0x339   : > { %v592_v6 = vmul.f32 %v822_v4, %v587_v5  ;;  %638 = vst.msk [vmem:[#allocation3] sm:$0xff] %vm386_vm3, %v587_v5 }
 0x33b   : > { %596 = vrot.lane.b32.xlu0 %v592_v6, %s916_s19 }
 0x33c   : > { %v589_v7 = vpop.permute.xlu1 %588 }
 0x33d   : > { %v593_v8 = vmul.f32 %v822_v4, %v589_v7  ;;  %639 = vst.msk [vmem:[#allocation3 + $0x8] sm:$0xff] %vm386_vm3, %v589_v7 }
 0x33f   : > { %620 = vrot.lane.b32.xlu0 %v892_v9, %s915_s16  ;;  %598 = vrot.lane.b32.xlu1 %v593_v8, %s916_s19 }
 0x343   : > { %622 = vrot.lane.b32.xlu1 %v894_v10, %s915_s16 }
 0x3ad   : > { %v597_v11 = vpop.permute.xlu0 %596 }
 0x3ae   : > { %v602_v12 = vadd.f32 %v597_v11, %v1016_v24 }
 0x3b0   : > { %v823_v13 = vmul.f32 -1.442695, %v602_v12 }
 0x3b1   : > { %v599_v14 = vpop.permute.xlu1 %598  ;;  %v621_v22 = vpop.permute.xlu0 %620 }
 0x3b2   : > { %895 = vpow2.f32 %v823_v13  ;;  %v603_v15 = vadd.f32 %v599_v14, %v1019_v27 }
 0x3b4   : > { %v824_v16 = vmul.f32 -1.442695, %v603_v15 }
 0x3b5   : > { %v623_v24 = vpop.permute.xlu1 %622 }
 0x3b6   : > { %897 = vpow2.f32 %v824_v16 }
 0x3bc   : > { %v896_v17 = vpop.eup %895 }
 0x3bd   : > { %v610_v18 = vadd.f32 1.0, %v896_v17 }
 0x3bf   : > { %899 = vrcp.f32 %v610_v18 }
 0x3c0   : > { %v898_v19 = vpop.eup %897 }
 0x3c1   : > { %v611_v20 = vadd.f32 1.0, %v898_v19 }
 0x3c3   : > { %901 = vrcp.f32 %v611_v20 }
 0x3c9   : > { %v900_v21 = vpop.eup %899 }
 0x3ca   : > { %v626_v23 = vmul.f32 %v900_v21, %v621_v22 }
 0x3cc   : > { %630 = vrot.lane.b32.xlu0 %v626_v23, %s914_s13  ;;  %v688_v26 = vmul.f32 %v626_v23, %v626_v23  ;;  %v657_v29 = vsel %vm656_vm5, %v626_v23, 0.0  ;;  %v832_v57 = vpack.c.bf16 %v626_v23, %v626_v23 }
 0x3cd   : > { %v902_v25 = vpop.eup %901 }
 0x3ce   : > { %v627_v28 = vmul.f32 %v902_v25, %v623_v24  ;;  %v690_v32 = vsel %vm656_vm5, %v688_v26, 0.0 }
 0x3d0   : > { %v658_v27 = vsel %vm656_vm5, %v627_v28, 0.0  ;;  %v689_v30 = vmul.f32 %v627_v28, %v627_v28  ;;  %632 = vrot.lane.b32.xlu1 %v627_v28, %s914_s13  ;;  %v833_v58 = vpack.c.bf16 %v627_v28, %v627_v28 }
 0x3d1   : > { %v659_v31 = vadd.f32 %v658_v27, %v657_v29 }
 0x3d2   : > { %v691_v33 = vsel %vm656_vm5, %v689_v30, 0.0 }
 0x3d3   : > { %v660_v34 = vrot.slane %v659_v31, 4  ;;  %v692_v35 = vadd.f32 %v691_v33, %v690_v32 }
 0x3d5   : > { %v661_v39 = vadd.f32 %v660_v34, %v659_v31  ;;  %v693_v40 = vrot.slane %v692_v35, 4 }
 0x3d7   : > { %v662_v41 = vrot.slane %v661_v39, 2  ;;  %v694_v44 = vadd.f32 %v693_v40, %v692_v35 }
 0x3d9   : > { %v663_v45 = vadd.f32 %v662_v41, %v661_v39  ;;  %v695_v46 = vrot.slane %v694_v44, 2 }
 0x3db   : > { %v664_v47 = vrot.slane %v663_v45, 1  ;;  %v696_v49 = vadd.f32 %v695_v46, %v694_v44 }
 0x3dd   : > { %v665_v50 = vadd.f32 %v664_v47, %v663_v45  ;;  %v697_v51 = vrot.slane %v696_v49, 1 }
 0x3df   : > { %v673_v52 = vrot.slane %v665_v50, %v672_v48  ;;  %v698_v53 = vadd.f32 %v697_v51, %v696_v49 }
 0x3e1   : > { %v680_v54 = vrot.slane %v673_v52, %v672_v48  ;;  %v706_v55 = vrot.slane %v698_v53, %v672_v48 }
 0x3e3   : > { %681 = vrot.lane.b32.xlu0 %v680_v54, %s914_s13  ;;  %v713_v56 = vrot.slane %v706_v55, %v672_v48 }
 0x3e5   : > { %714 = vrot.lane.b32.xlu1 %v713_v56, %s914_s13 }
 0x3e7   : > { %646 = vrot.lane.b32.xlu0 %v832_v57, %s914_s13 }
 0x3e9   : > { %648 = vrot.lane.b32.xlu1 %v833_v58, %s914_s13 }
 0x43e   : > { %v631_v59 = vpop.permute.xlu0 %630 }
 0x43f   : > { %636 = vst.msk [vmem:[#allocation2] sm:$0xff] %vm386_vm3, %v631_v59 }
 0x442   : > { %v633_v60 = vpop.permute.xlu1 %632 }
 0x443   : > { %637 = vst.msk [vmem:[#allocation2 + $0x8] sm:$0xff] %vm386_vm3, %v633_v60 }
 0x455   : > { %v682_v62 = vpop.permute.xlu0 %681 }
 0x456   : > { %v684_v0 = vadd.f32 %v682_v62, %v655_v61 }
 0x457   : > { %v715_v1 = vpop.permute.xlu1 %714 }
 0x458   : > { %686 = vst.msk [vmem:[%s1076_s8] sm:$0x1] %vm685_vm6, %v684_v0  ;;  %v717_v2 = vadd.f32 %v715_v1, %v687_v63 }
 0x459   : > { %v647_v3 = vpop.permute.xlu0 %646 }
 0x45a   : > { %718 = vst.msk [vmem:[%s1077_s9] sm:$0x1] %vm685_vm6, %v717_v2 }
 0x45b   : > { %653 = vst.msk [vmem:[%s989_s22] sm:$0xf] %vm652_vm7, %v647_v3  ;;  %v649_v4 = vpop.permute.xlu1 %648 }
 0x45c   : > { %654 = vst.msk [vmem:[%s989_s22 + $0x4] sm:$0xf] %vm652_vm7, %v649_v4 }
 0x45d PF: > { %s20_s30 = sadd.s32 1, %s909_s30  }
 0x45e   : > { %p17_p5 = scmp.ge.s32.totalorder %s20_s30, 6  }
 0x460   :  { %19 = sbr.rel (!%p17_p5) target bundleno = 1 (0x1), region = 101 }

// kernel: egcn_forward.9
= control target key start
LH: loop header
LB: loop body
LE: loop exit
PB: predicated region body
PF: predicated region fallthrough
CT: control target
= control target key end

     0   :  { %vm92_vm0 = vcmask 261120   ;;  %s310_s3 = inlined_call_operand.vmem [shape: bf16[32,128], index: 3, kind: input, shape index: {}]   ;;  %s311_s0 = inlined_call_operand.vmem [shape: bf16[64,32], index: 0, kind: input, shape index: {}]   ;;  %s312_s1 = inlined_call_operand.vmem [shape: f32[1,32], index: 1, kind: input, shape index: {}]   ;;  %s313_s2 = inlined_call_operand.vmem [shape: f32[1,32], index: 2, kind: input, shape index: {}]   ;;  %s314_s4 = inlined_call_operand.vmem [shape: f32[64,128], index: 4, kind: output, shape index: {}]  }
   0x1   :  { %v231_v0 = vld [vmem:[%s310_s3] sm:$0xff]   ;;  %v232_v1 = vld [vmem:[%s310_s3 + $0x8] sm:$0xff]   ;;  %v207_v6 = vld [vmem:[%s311_s0 + $0x10] sm:$0xff]  }
   0x2   :  { %215 = vmatprep.subr.bf16.mxu0 %v231_v0  ;;  %227 = vmatprep.subr.bf16.mxu1 %v231_v0  ;;  %v191_v2 = vld [vmem:[%s311_s0] sm:$0xff]   ;;  %v206_v7 = vld [vmem:[%s311_s0 + $0x8] sm:$0xff]   ;;  %v208_v8 = vld [vmem:[%s311_s0 + $0x18] sm:$0xff]   ;;  %v200_v10 = vunpack.c.l.bf16 %v207_v6  ;;  %v201_v11 = vunpack.c.h.bf16 %v207_v6 }
   0x3   :  { %v182_v3 = vld [vmem:[%s312_s1] ss:$0 sm:$0xff]  ;;  %216 = vmatpush3.bf16.msra.mxu0 %v231_v0  ;;  %229 = vmatpush3.bf16.msra.mxu1 %v231_v0  ;;  %v192_v4 = vunpack.c.l.bf16 %v191_v2  ;;  %v193_v5 = vunpack.c.h.bf16 %v191_v2  ;;  %v196_v12 = vunpack.c.l.bf16 %v206_v7  ;;  %v197_v13 = vunpack.c.h.bf16 %v206_v7 }
   0x4   :  { %217 = vmatprep.subr.bf16.mxu0 %v232_v1  ;;  %228 = vmatprep.subr.bf16.mxu1 %v232_v1  ;;  %v183_v9 = vld [vmem:[%s313_s2] ss:$0 sm:$0xff]  ;;  %v204_v16 = vunpack.c.l.bf16 %v208_v8  ;;  %v205_v17 = vunpack.c.h.bf16 %v208_v8  ;;  %v45_v18 = vmul.f32 %v200_v10, %v182_v3  ;;  %v46_v19 = vmul.f32 %v201_v11, %v182_v3 }
   0x5   :  { %v41_v14 = vmul.f32 %v192_v4, %v182_v3  ;;  %v42_v15 = vmul.f32 %v193_v5, %v182_v3  ;;  %v43_v20 = vmul.f32 %v196_v12, %v182_v3  ;;  %v44_v21 = vmul.f32 %v197_v13, %v182_v3 }
   0x6   :  { %v47_v24 = vmul.f32 %v204_v16, %v182_v3  ;;  %v60_v25 = vadd.f32 %v183_v9, %v45_v18  ;;  %v61_v26 = vadd.f32 %v183_v9, %v46_v19  ;;  %v48_v31 = vmul.f32 %v205_v17, %v182_v3 }
   0x7   :  { %218 = vmatpush3.bf16.msra.mxu0 %v232_v1  ;;  %230 = vmatpush3.bf16.msra.mxu1 %v232_v1  ;;  %v56_v22 = vadd.f32 %v183_v9, %v41_v14  ;;  %v57_v23 = vadd.f32 %v183_v9, %v42_v15  ;;  %v58_v27 = vadd.f32 %v183_v9, %v43_v20 }
   0x8   :  { %v59_v28 = vadd.f32 %v183_v9, %v44_v21  ;;  %v62_v32 = vadd.f32 %v183_v9, %v47_v24  ;;  %v68_v33 = vmax.f32 %v60_v25, 0.0  ;;  %v69_v34 = vmax.f32 %v61_v26, 0.0 }
   0x9   :  { %v64_v29 = vmax.f32 %v56_v22, 0.0  ;;  %v65_v30 = vmax.f32 %v57_v23, 0.0  ;;  %v66_v35 = vmax.f32 %v58_v27, 0.0  ;;  %v63_v38 = vadd.f32 %v183_v9, %v48_v31 }
   0xa   :  { %v67_v36 = vmax.f32 %v59_v28, 0.0  ;;  %v70_v39 = vmax.f32 %v62_v32, 0.0  ;;  %v74_v40 = vpack.c.bf16 %v69_v34, %v68_v33 }
   0xb   :  { %v72_v37 = vpack.c.bf16 %v65_v30, %v64_v29  ;;  %v71_v42 = vmax.f32 %v63_v38, 0.0 }
   0xc   :  { %v73_v41 = vpack.c.bf16 %v67_v36, %v66_v35  ;;  %223 = vmatprep.mubr.msk.bf16.mxu1 %vm92_vm0, %v74_v40 }
   0xd   :  { %219 = vmatprep.mubr.msk.bf16.mxu0 %vm92_vm0, %v72_v37  ;;  %v75_v43 = vpack.c.bf16 %v71_v42, %v70_v39 }
   0xe   :  { %220 = vmatmul.mubr.msk.bf16.vlgmr.msra.gmra.mrb[0].mxu0 %vm92_vm0, %v73_v41 }
   0xf   :  { %224 = vmatmul.mubr.msk.bf16.vlgmr.msra.gmra.mrb[0].mxu1 %vm92_vm0, %v75_v43 }
  0xe1   :  { %v221_v44 = vpop.f32.mrb[0].mxu0 }
  0xe2   :  { %172 = vst [vmem:[%s314_s4 + $0x10] sm:$0xff] %v221_v44  ;;  %v139_v45 = vpop.f32.mrb[1].mxu0  ;;  %v225_v47 = vpop.f32.mrb[0].mxu1 }
  0xe3   :  { %170 = vst [vmem:[%s314_s4] sm:$0xff] %v139_v45  ;;  %v222_v46 = vpop.f32.mrb[2].mxu0  ;;  %176 = vst [vmem:[%s314_s4 + $0x30] sm:$0xff] %v225_v47  ;;  %v155_v49 = vpop.f32.mrb[1].mxu1 }
  0xe4   :  { %173 = vst [vmem:[%s314_s4 + $0x18] sm:$0xff] %v222_v46  ;;  %v142_v48 = vpop.f32.mrb[3].mxu0  ;;  %174 = vst [vmem:[%s314_s4 + $0x20] sm:$0xff] %v155_v49  ;;  %v226_v50 = vpop.f32.mrb[2].mxu1 }
  0xe5   :  { %171 = vst [vmem:[%s314_s4 + $0x8] sm:$0xff] %v142_v48  ;;  %177 = vst [vmem:[%s314_s4 + $0x38] sm:$0xff] %v226_v50  ;;  %v158_v51 = vpop.f32.mrb[3].mxu1 }
  0xe6   :  { %175 = vst [vmem:[%s314_s4 + $0x28] sm:$0xff] %v158_v51 }

</bundles_post_ra>
